<compile_context>
chip_gen: v7x
topology: tpu7x:2x2x1
jax: 0.10.0
libtpu: 0.0.40
codegen_flags: <defaults>
</compile_context>

<pallas_src>
import jax
import jax.numpy as jnp
from jax.experimental import pallas as pl
from jax.experimental.pallas import tpu as pltpu


def _attention_kernel(v_rows_ref, v_cols_ref, adj_ref, w_ref, b_ref,
                      out_ref, logits_ref, acc_ref):
    k = pl.program_id(1)

    @pl.when(k == 0)
    def _init():
        acc_ref[...] = jnp.zeros_like(acc_ref)

    # Reduction over adjacency column tiles:
    #   acc += A[i, k] @ sum_f(sigmoid(V[k, :]))   ( == sum(A @ vn, axis=1) )
    vn_k = jax.nn.sigmoid(v_cols_ref[...].astype(jnp.float32))       # (TK, F)
    s_k = jnp.sum(vn_k, axis=1, keepdims=True)                       # (TK, 1)
    acc_ref[...] += jnp.dot(adj_ref[...].astype(jnp.float32), s_k,
                            preferred_element_type=jnp.float32)      # (TM, 1)

    @pl.when(k == pl.num_programs(1) - 1)
    def _finalize():
        vn_i = jax.nn.sigmoid(v_rows_ref[...].astype(jnp.float32))   # (TM, F)
        # dense_layer(vn): lane-dense (1, F) weight, VPU mul + lane reduce.
        dense = jnp.sum(vn_i * w_ref[...].astype(jnp.float32),
                        axis=1, keepdims=True)                       # (TM, 1)
        logits = dense + b_ref[0] + acc_ref[...]                     # (TM, 1)
        logits_ref[...] = logits.astype(logits_ref.dtype)
        # softmax over dim=1 (singleton axis -> identically 1.0); kept explicit.
        m = jnp.max(logits, axis=1, keepdims=True)
        e = jnp.exp(logits - m)
        denom = jnp.sum(e, axis=1, keepdims=True)
        out_ref[...] = (e * pl.reciprocal(denom, approx=True)).astype(out_ref.dtype)


def _pick_tile(n, target, align):
    """Largest tile <= target that divides n and is a multiple of `align`
    (falls back to the full dimension)."""
    if n <= target:
        return n
    t = (target // align) * align
    while t >= align:
        if n % t == 0:
            return t
        t -= align
    return n


def attention_network(vertex_matrix, adjacency_matrix, weight, bias,
                      *, return_logits=False):
    """Pallas forward of AttentionNetwork.

    vertex_matrix: (N, F), adjacency_matrix: (N, N), weight: (1, F), bias: (1,).
    (The original module's broadcasting requires F == N.)
    Returns the (N, 1) attention weights; optionally also the pre-softmax logits.
    """
    N, F = vertex_matrix.shape
    assert adjacency_matrix.shape == (N, N)
    assert weight.shape == (1, F)

    # Row tile (sublane axis, multiple of 8) and adjacency column tile (lane
    # axis, multiple of 128). The caps keep double-buffered tiles small so the
    # same kernel scales to large N within v7x's 64 MiB VMEM.
    tm = _pick_tile(N, 128, 8)
    tk = _pick_tile(N, 256, 128)
    grid = (N // tm, N // tk)

    # Bias is a single 32-bit scalar -> SMEM (avoids a padded (8,128) VMEM tile).
    bias_smem = jnp.asarray(bias, dtype=jnp.float32).reshape((1,))

    weights, logits = pl.pallas_call(
        _attention_kernel,
        out_shape=(
            jax.ShapeDtypeStruct((N, 1), jnp.float32),   # attention weights
            jax.ShapeDtypeStruct((N, 1), jnp.float32),   # pre-softmax logits
        ),
        grid=grid,
        in_specs=[
            pl.BlockSpec((tm, F), lambda i, k: (i, 0)),         # vertex rows (dense)
            pl.BlockSpec((tk, F), lambda i, k: (k, 0)),         # vertex rows (s_k)
            pl.BlockSpec((tm, tk), lambda i, k: (i, k)),        # adjacency tile
            pl.BlockSpec((1, F), lambda i, k: (0, 0)),          # dense weight (1, F)
            pl.BlockSpec(memory_space=pltpu.MemorySpace.SMEM),  # bias scalar
        ],
        out_specs=(
            pl.BlockSpec((tm, 1), lambda i, k: (i, 0)),
            pl.BlockSpec((tm, 1), lambda i, k: (i, 0)),
        ),
        scratch_shapes=[pltpu.VMEM((tm, 1), jnp.float32)],
        compiler_params=pltpu.CompilerParams(
            dimension_semantics=("parallel", "arbitrary")),
    )(vertex_matrix, vertex_matrix, adjacency_matrix, weight, bias_smem)

    return (weights, logits) if return_logits else weights


def reference(vertex_matrix, adjacency_matrix, weight, bias):
    """Direct transcription of the PyTorch forward (high-precision matmuls)."""
    vn = jax.nn.sigmoid(vertex_matrix)
    mu = jnp.matmul(adjacency_matrix, vn, precision="highest")
    mu_self = jnp.diag(mu)
    mu_sum = jnp.sum(mu, axis=1) - mu_self
    logits = jnp.matmul(vn, weight.T, precision="highest") + bias
    logits = logits + mu_self[:, None] + mu_sum[:, None]
    return jax.nn.softmax(logits, axis=1), logits


if __name__ == "__main__":
    def run_case(n, key):
        k1, k2, k3, k4 = jax.random.split(key, 4)
        # The module's diag/broadcast arithmetic requires input_size == N.
        vertex = jax.random.normal(k1, (n, n), dtype=jnp.float32)
        adjacency = (jax.random.uniform(k2, (n, n)) < 0.3).astype(jnp.float32)
        bound = 1.0 / (n ** 0.5)                 # nn.Linear(n, 1) init range
        weight = jax.random.uniform(k3, (1, n), minval=-bound, maxval=bound,
                                    dtype=jnp.float32)
        bias = jax.random.uniform(k4, (1,), minval=-bound, maxval=bound,
                                  dtype=jnp.float32)

        out, logits = attention_network(vertex, adjacency, weight, bias,
                                        return_logits=True)
        out, logits = jax.block_until_ready((out, logits))
        ref_out, ref_logits = reference(vertex, adjacency, weight, bias)

        assert out.shape == (n, 1) and logits.shape == (n, 1)
        # softmax over a singleton dim is identically 1.0 (approx-recip slack).
        assert jnp.allclose(out, ref_out, atol=1e-3), f"weights mismatch (N={n})"
        # logits: tolerance covers summation-order / MXU-pass precision deltas.
        assert jnp.allclose(logits, ref_logits, rtol=5e-3, atol=1e-3), \
            f"logits mismatch (N={n})"

    root = jax.random.PRNGKey(0)
    k_small, k_large = jax.random.split(root)
    run_case(16, k_small)    # single-block grid (1, 1)
    run_case(512, k_large)   # tiled grid (4, 2): exercises reduction accumulator
    print("KERNEL_OK")
</pallas_src>

<mosaic_0001>
module attributes {stable_mosaic.version = 11 : i64} {
  func.func @_attention_kernel(%arg0: i32, %arg1: i32, %arg2: memref<16x16xf32, #tpu.memory_space<vmem>>, %arg3: memref<16x16xf32, #tpu.memory_space<vmem>>, %arg4: memref<16x16xf32, #tpu.memory_space<vmem>>, %arg5: memref<1x16xf32, #tpu.memory_space<vmem>>, %arg6: memref<1xf32, #tpu.memory_space<smem>>, %arg7: memref<16x1xf32, #tpu.memory_space<vmem>>, %arg8: memref<16x1xf32, #tpu.memory_space<vmem>>, %arg9: memref<16x1xf32, #tpu.memory_space<vmem>>) attributes {dimension_semantics = [#tpu.dimension_semantics<parallel>, #tpu.dimension_semantics<arbitrary>], iteration_bounds = array<i64: 1, 1>, scalar_prefetch = 0 : i64, scratch_operands = 1 : i64, tpu.core_type = #tpu.core_type<tc>, window_params = [{transform_indices = @transform_0, window_bounds = array<i64: 16, 16>}, {transform_indices = @transform_1, window_bounds = array<i64: 16, 16>}, {transform_indices = @transform_2, window_bounds = array<i64: 16, 16>}, {pipeline_mode = #tpu.pipeline_mode<synchronous>, transform_indices = @transform_3, window_bounds = array<i64: 1, 16>}, {transform_indices = @transform_4, window_bounds = array<i64: 1>}, {transform_indices = @transform_5, window_bounds = array<i64: 16, 1>}, {transform_indices = @transform_6, window_bounds = array<i64: 16, 1>}]} {
    %c0_i32 = arith.constant 0 : i32
    %0 = arith.cmpi eq, %arg1, %c0_i32 : i32
    %1 = arith.extui %0 : i1 to i32
    %c0_i32_0 = arith.constant 0 : i32
    %2 = arith.cmpi ne, %1, %c0_i32_0 : i32
    scf.if %2 {
      %cst_12 = arith.constant 0.000000e+00 : f32
      %19 = vector.broadcast %cst_12 : f32 to vector<16x1xf32>
      %c0_13 = arith.constant 0 : index
      %c0_14 = arith.constant 0 : index
      %20 = vector.load %arg9[%c0_13, %c0_14] : memref<16x1xf32, #tpu.memory_space<vmem>>, vector<16x1xf32>
      tpu.vector_store %arg9[%c0_13, %c0_14], %19 {strides = array<i32>} : memref<16x1xf32, #tpu.memory_space<vmem>>, vector<16x1xf32>,
    } else {
    }
    %c0 = arith.constant 0 : index
    %c0_1 = arith.constant 0 : index
    %3 = vector.load %arg3[%c0, %c0_1] : memref<16x16xf32, #tpu.memory_space<vmem>>, vector<16x16xf32>
    %4 = arith.negf %3 : vector<16x16xf32>
    %5 = math.exp %4 : vector<16x16xf32>
    %cst = arith.constant 1.000000e+00 : f32
    %6 = vector.broadcast %cst : f32 to vector<16x16xf32>
    %7 = arith.addf %6, %5 : vector<16x16xf32>
    %8 = arith.divf %6, %7 : vector<16x16xf32>
    %cst_2 = arith.constant dense<0.000000e+00> : vector<16xf32>
    %9 = vector.multi_reduction <add>, %8, %cst_2 [1] : vector<16x16xf32> to vector<16xf32>
    %10 = vector.shape_cast %9 : vector<16xf32> to vector<16x1xf32>
    %c0_3 = arith.constant 0 : index
    %c0_4 = arith.constant 0 : index
    %11 = vector.load %arg9[%c0_3, %c0_4] : memref<16x1xf32, #tpu.memory_space<vmem>>, vector<16x1xf32>
    %c0_5 = arith.constant 0 : index
    %c0_6 = arith.constant 0 : index
    %12 = vector.load %arg4[%c0_5, %c0_6] : memref<16x16xf32, #tpu.memory_space<vmem>>, vector<16x16xf32>
    %cst_7 = arith.constant dense<0.000000e+00> : vector<16x1xf32>
    %13 = tpu.matmul %12, %10, %cst_7 {dimension_numbers = #tpu.dot_dimension_numbers<[1], [0], [0], [1], [0, 0, 1, 1], [], []>} : vector<16x16xf32>, vector<16x1xf32>, vector<16x1xf32> -> vector<16x1xf32>
    %14 = arith.addf %11, %13 : vector<16x1xf32>
    %c0_8 = arith.constant 0 : index
    %c0_9 = arith.constant 0 : index
    %15 = vector.load %arg9[%c0_8, %c0_9] : memref<16x1xf32, #tpu.memory_space<vmem>>, vector<16x1xf32>
    tpu.vector_store %arg9[%c0_8, %c0_9], %14 {strides = array<i32>} : memref<16x1xf32, #tpu.memory_space<vmem>>, vector<16x1xf32>,
    %c0_i32_10 = arith.constant 0 : i32
    %16 = arith.cmpi eq, %arg1, %c0_i32_10 : i32
    %17 = arith.extui %16 : i1 to i32
    %c0_i32_11 = arith.constant 0 : i32
    %18 = arith.cmpi ne, %17, %c0_i32_11 : i32
    scf.if %18 {
      %c0_12 = arith.constant 0 : index
      %c0_13 = arith.constant 0 : index
      %19 = vector.load %arg2[%c0_12, %c0_13] : memref<16x16xf32, #tpu.memory_space<vmem>>, vector<16x16xf32>
      %20 = arith.negf %19 : vector<16x16xf32>
      %21 = math.exp %20 : vector<16x16xf32>
      %cst_14 = arith.constant 1.000000e+00 : f32
      %22 = vector.broadcast %cst_14 : f32 to vector<16x16xf32>
      %23 = arith.addf %22, %21 : vector<16x16xf32>
      %24 = arith.divf %22, %23 : vector<16x16xf32>
      %c0_15 = arith.constant 0 : index
      %c0_16 = arith.constant 0 : index
      %25 = vector.load %arg5[%c0_15, %c0_16] : memref<1x16xf32, #tpu.memory_space<vmem>>, vector<1x16xf32>
      %26 = vector.broadcast %25 : vector<1x16xf32> to vector<16x16xf32>
      %27 = arith.mulf %24, %26 : vector<16x16xf32>
      %cst_17 = arith.constant dense<0.000000e+00> : vector<16xf32>
      %28 = vector.multi_reduction <add>, %27, %cst_17 [1] : vector<16x16xf32> to vector<16xf32>
      %29 = vector.shape_cast %28 : vector<16xf32> to vector<16x1xf32>
      %c0_18 = arith.constant 0 : index
      %30 = memref.load %arg6[%c0_18] : memref<1xf32, #tpu.memory_space<smem>>
      %31 = vector.broadcast %30 : f32 to vector<16x1xf32>
      %32 = arith.addf %29, %31 : vector<16x1xf32>
      %c0_19 = arith.constant 0 : index
      %c0_20 = arith.constant 0 : index
      %33 = vector.load %arg9[%c0_19, %c0_20] : memref<16x1xf32, #tpu.memory_space<vmem>>, vector<16x1xf32>
      %34 = arith.addf %32, %33 : vector<16x1xf32>
      %c0_21 = arith.constant 0 : index
      %c0_22 = arith.constant 0 : index
      %35 = vector.load %arg8[%c0_21, %c0_22] : memref<16x1xf32, #tpu.memory_space<vmem>>, vector<16x1xf32>
      tpu.vector_store %arg8[%c0_21, %c0_22], %34 {strides = array<i32>} : memref<16x1xf32, #tpu.memory_space<vmem>>, vector<16x1xf32>,
      %cst_23 = arith.constant dense<0xFF800000> : vector<16xf32>
      %36 = vector.multi_reduction <maximumf>, %34, %cst_23 [1] : vector<16x1xf32> to vector<16xf32>
      %37 = vector.shape_cast %36 : vector<16xf32> to vector<16x1xf32>
      %38 = arith.subf %34, %37 : vector<16x1xf32>
      %39 = math.exp %38 : vector<16x1xf32>
      %cst_24 = arith.constant dense<0.000000e+00> : vector<16xf32>
      %40 = vector.multi_reduction <add>, %39, %cst_24 [1] : vector<16x1xf32> to vector<16xf32>
      %41 = vector.shape_cast %40 : vector<16xf32> to vector<16x1xf32>
      %42 = tpu.reciprocal %41 {approx = true} : vector<16x1xf32> -> vector<16x1xf32>
      %43 = arith.mulf %39, %42 : vector<16x1xf32>
      %c0_25 = arith.constant 0 : index
      %c0_26 = arith.constant 0 : index
      %44 = vector.load %arg7[%c0_25, %c0_26] : memref<16x1xf32, #tpu.memory_space<vmem>>, vector<16x1xf32>
      tpu.vector_store %arg7[%c0_25, %c0_26], %43 {strides = array<i32>} : memref<16x1xf32, #tpu.memory_space<vmem>>, vector<16x1xf32>,
    } else {
    }
    return
  }
  func.func @transform_0(%arg0: i32, %arg1: i32) -> (i32, i32) {
    %c0_i32 = arith.constant 0 : i32
    %c0_i32_0 = arith.constant 0 : i32
    return %arg0, %c0_i32 : i32, i32
  }
  func.func @transform_1(%arg0: i32, %arg1: i32) -> (i32, i32) {
    %c0_i32 = arith.constant 0 : i32
    %c0_i32_0 = arith.constant 0 : i32
    return %arg1, %c0_i32 : i32, i32
  }
  func.func @transform_2(%arg0: i32, %arg1: i32) -> (i32, i32) {
    %c0_i32 = arith.constant 0 : i32
    return %arg0, %arg1 : i32, i32
  }
  func.func @transform_3(%arg0: i32, %arg1: i32) -> (i32, i32) {
    %c0_i32 = arith.constant 0 : i32
    %c0_i32_0 = arith.constant 0 : i32
    %c0_i32_1 = arith.constant 0 : i32
    return %c0_i32, %c0_i32_0 : i32, i32
  }
  func.func @transform_4(%arg0: i32, %arg1: i32) -> i32 {
    %c0_i32 = arith.constant 0 : i32
    %c0_i32_0 = arith.constant 0 : i32
    return %c0_i32 : i32
  }
  func.func @transform_5(%arg0: i32, %arg1: i32) -> (i32, i32) {
    %c0_i32 = arith.constant 0 : i32
    %c0_i32_0 = arith.constant 0 : i32
    return %arg0, %c0_i32 : i32, i32
  }
  func.func @transform_6(%arg0: i32, %arg1: i32) -> (i32, i32) {
    %c0_i32 = arith.constant 0 : i32
    %c0_i32_0 = arith.constant 0 : i32
    return %arg0, %c0_i32 : i32, i32
  }
}

</mosaic_0001>

<bundles_post_ra>
// kernel: tpu_custom_call.1
= control target key start
LH: loop header
LB: loop body
LE: loop exit
PB: predicated region body
PF: predicated region fallthrough
CT: control target
= control target key end

     0   :  { %13 = vsyncpa [#allocation5], 0  ;;  %s495_s0 = inlined_call_operand.hbm [shape: f32[16,16], index: 0, kind: input, shape index: {}]   ;;  %s496_s1 = inlined_call_operand.hbm [shape: f32[16,16], index: 1, kind: input, shape index: {}]   ;;  %s497_s2 = inlined_call_operand.hbm [shape: f32[16,16], index: 2, kind: input, shape index: {}]   ;;  %s498_s3 = inlined_call_operand.vmem [shape: f32[1,16], index: 3, kind: input, shape index: {}]   ;;  %s499_s4 = inlined_call_operand.<no memory space> [shape: f32[1], index: 4, kind: input, shape index: {}]   ;;  %s500_s5 = inlined_call_operand.vmem [shape: f32[16,1], index: 5, kind: output, shape index: {0}]   ;;  %s501_s6 = inlined_call_operand.vmem [shape: f32[16,1], index: 6, kind: output, shape index: {1}]  }
   0x1   :  { %14 = vsyncpa [#allocation7], 0  ;;  %s370_s21 = smov [#allocation6]   ;;  %s371_s23 = smov [#allocation4]  }
   0x2   :  { %s32_s22 = sshll.u32 %s370_s21, 4  ;;  %s20_s24 = sshll.u32 %s371_s23, 4  ;;  %s33_s22 = int_to_ptr.vmem [resolvable:$true] %s32_s22  ;;  %s411_s24 = int_to_ptr.vmem [resolvable:$true] %s20_s24 }
   0x3   :  { %s300_s27 = scalar_lea.hbm %s496_s1, 256 }
   0x4   :  { %p301_p0 = scmp.ne.s32.totalorder %s496_s1, %s300_s27  ;;  %p304_p1 = scmp.lt.u32.totalorder %s300_s27, %s496_s1 }
   0x6   :  { %p306_p2 = pnand %p304_p1, %p301_p0 }
   0x8   :  { %309 = shalt.err (!%p306_p2)
}
   0x9   :  { %s310_s8 = scalar_lea.vmem %s33_s22, 256  ;;  %p315_p4 = scmp.lt.s32.totalorder %s33_s22, %s33_s22 }
   0xa   :  { %p311_p3 = scmp.ne.s32.totalorder %s33_s22, %s310_s8  ;;  %p316_p5 = scmp.lt.s32.totalorder %s310_s8, %s310_s8 }
   0xc   :  { %p317_p6 = por %p316_p5, %p315_p4 }
   0xe   :  { %p318_p7 = pnand %p317_p6, %p311_p3 }
  0x10   :  { %321 = shalt.err (!%p318_p7)
}
  0x11   :  { %s372_s9 = smov 128   ;;  %s373_s10 = smov 8  }
  0x12   :  { %38 = dma.hbm_to_vmem [thread:$0]  %s496_s1, 256, %s33_s22, [#allocation7], %s372_s9, %s372_s9, %s373_s10  }
  0x13   :  { %s322_s15 = scalar_lea.hbm %s495_s0, 256 }
  0x14   :  { %p323_p8 = scmp.ne.s32.totalorder %s495_s0, %s322_s15  ;;  %p326_p9 = scmp.lt.u32.totalorder %s322_s15, %s495_s0 }
  0x16   :  { %p328_p10 = pnand %p326_p9, %p323_p8 }
  0x18   :  { %331 = shalt.err (!%p328_p10)
}
  0x19   :  { %s332_s20 = scalar_lea.vmem %s411_s24, 256  ;;  %p337_p12 = scmp.lt.s32.totalorder %s411_s24, %s411_s24 }
  0x1a   :  { %p333_p11 = scmp.ne.s32.totalorder %s411_s24, %s332_s20  ;;  %p338_p13 = scmp.lt.s32.totalorder %s332_s20, %s332_s20 }
  0x1c   :  { %p339_p0 = por %p338_p13, %p337_p12 }
  0x1e   :  { %p340_p1 = pnand %p339_p0, %p333_p11 }
  0x20   :  { %343 = shalt.err (!%p340_p1)
}
  0x21   :  { %26 = dma.hbm_to_vmem [thread:$0]  %s495_s0, 256, %s411_s24, [#allocation5], %s372_s9, %s372_s9, %s373_s10  }
  0x22   :  { %s374_s22 = smov [#allocation8]   ;;  %s344_s27 = scalar_lea.hbm %s497_s2, 256 }
  0x23   :  { %s44_s23 = sshll.u32 %s374_s22, 4  ;;  %p345_p2 = scmp.ne.s32.totalorder %s497_s2, %s344_s27  ;;  %s45_s23 = int_to_ptr.vmem [resolvable:$true] %s44_s23 }
  0x24   :  { %p348_p3 = scmp.lt.u32.totalorder %s344_s27, %s497_s2 }
  0x26   :  { %p350_p4 = pnand %p348_p3, %p345_p2 }
  0x28   :  { %353 = shalt.err (!%p350_p4)
}
  0x29   :  { %s354_s8 = scalar_lea.vmem %s45_s23, 256  ;;  %p359_p6 = scmp.lt.s32.totalorder %s45_s23, %s45_s23 }
  0x2a   :  { %p355_p5 = scmp.ne.s32.totalorder %s45_s23, %s354_s8  ;;  %p360_p7 = scmp.lt.s32.totalorder %s354_s8, %s354_s8 }
  0x2c   :  { %p361_p8 = por %p360_p7, %p359_p6 }
  0x2e   :  { %p362_p9 = pnand %p361_p8, %p355_p5 }
  0x30   :  { %365 = shalt.err (!%p362_p9)
}
  0x31   :  { %50 = dma.hbm_to_vmem [thread:$0]  %s497_s2, 256, %s45_s23, [#allocation7], %s372_s9, %s372_s9, %s373_s10  }
  0x32   :  { %366 = dma.done.wait [#allocation5], 256  }
  0x33   :  { %367 = vsyncadd [#allocation5], 4294967040 }
  0x34   :  { %368 = dma.done.wait [#allocation7], 512  }
  0x35   :  { %369 = vsyncadd [#allocation7], 4294966784  ;;  %v71_v0 = vld [vmem:[#allocation6] sm:$0xff]  ;;  %v72_v1 = vld [vmem:[#allocation6 + $0x8] sm:$0xff]  ;;  %vm85_vm0 = vcmask 130048   ;;  %vm68_vm1 = vcmask 7168   ;;  %v215_v41 = vstv %s499_s4 }
  0x36   :  { %v248_v2 = vmul.f32 -1.442695, %v71_v0  ;;  %v249_v3 = vmul.f32 -1.442695, %v72_v1  ;;  %v94_v12 = vld [vmem:[#allocation8] sm:$0xff]  ;;  %v186_v14 = vld [vmem:[#allocation4 + $0x8] sm:$0xff] }
  0x37   :  { %263 = vmatprep.mubr.msk.f32.mxu0 %vm85_vm0, %v94_v12  ;;  %v185_v13 = vld [vmem:[#allocation4] sm:$0xff]  ;;  %v253_v16 = vmul.f32 -1.442695, %v186_v14  ;;  %v375_v17 = vmov 0.0   ;;  %v254_v22 = vld [vmem:[%s498_s3] ss:$0 sm:$0xff] }
  0x38   :  { %276 = vpow2.f32 %v248_v2  ;;  %v252_v15 = vmul.f32 -1.442695, %v185_v13  ;;  %70 = vst.msk [vmem:[#allocation2 + $0x8] sm:$0xff] %vm68_vm1, %v375_v17  ;;  %69 = vst.msk [vmem:[#allocation2] sm:$0xff] %vm68_vm1, %v375_v17  ;;  %v95_v32 = vld [vmem:[#allocation8 + $0x8] sm:$0xff] }
  0x39   :  { %278 = vpow2.f32 %v249_v3 }
  0x3f   :  { %v93_v33 = vld [vmem:[#allocation2 + $0x8] sm:$0xff]  ;;  %v92_v35 = vld [vmem:[#allocation2] sm:$0xff] }
  0x42   :  { %v277_v4 = vpop.eup %276 }
  0x43   :  { %v279_v5 = vpop.eup %278  ;;  %v79_v6 = vadd.f32 1.0, %v277_v4 }
  0x44   :  { %v80_v7 = vadd.f32 1.0, %v279_v5 }
  0x45   :  { %280 = vrcp.f32 %v79_v6 }
  0x46   :  { %282 = vrcp.f32 %v80_v7 }
  0x47   :  { %284 = vpow2.f32 %v252_v15 }
  0x48   :  { %286 = vpow2.f32 %v253_v16 }
  0x4f   :  { %v281_v8 = vpop.eup %280 }
  0x50   :  { %v283_v9 = vpop.eup %282  ;;  %v86_v10 = vsel %vm85_vm0, %v281_v8, 0.0 }
  0x51   :  { %87 = vadd.xlane.f32.xlu0 %v86_v10  ;;  %v89_v11 = vsel %vm85_vm0, %v283_v9, 0.0  ;;  %v285_v18 = vpop.eup %284 }
  0x52   :  { %v287_v19 = vpop.eup %286  ;;  %v193_v20 = vadd.f32 1.0, %v285_v18 }
  0x53   :  { %v194_v21 = vadd.f32 1.0, %v287_v19 }
  0x54   :  { %288 = vrcp.f32 %v193_v20 }
  0x55   :  { %90 = vadd.xlane.f32.xlu0 %v89_v11  ;;  %290 = vrcp.f32 %v194_v21 }
  0x5e   :  { %v289_v23 = vpop.eup %288 }
  0x5f   :  { %v291_v24 = vpop.eup %290  ;;  %v206_v25 = vmul.f32 %v289_v23, %v254_v22 }
  0x60   :  { %v207_v26 = vmul.f32 %v291_v24, %v254_v22 }
  0x61   :  { %v208_v27 = vsel %vm85_vm0, %v206_v25, 0.0 }
  0x62   :  { %209 = vadd.xlane.f32.xlu1 %v208_v27  ;;  %v211_v28 = vsel %vm85_vm0, %v207_v26, 0.0 }
  0x66   :  { %212 = vadd.xlane.f32.xlu1 %v211_v28 }
  0xde   :  { %v88_v29 = vpop.xlane.xlu0 %87 }
  0xe2   :  { %v91_v30 = vpop.xlane.xlu0 %90 }
  0xe3   :  { %v266_v31 = vpack.c.bf16 %v91_v30, %v88_v29 }
  0xe5   :  { %267 = vmatprep.subr.bf16.mxu0 %v266_v31 }
  0xe6   :  { %269 = vmatpush3.bf16.msra.mxu0 %v266_v31 }
  0xe9   :  { %264 = vmatmul.mubr.msk.f32.vlgmr.msra.gmra.mrb[0].mxu0 %vm85_vm0, %v95_v32 }
  0xef   :  { %v210_v34 = vpop.xlane.xlu1 %209 }
  0xf0   :  { %v216_v43 = vadd.f32 %v215_v41, %v210_v34 }
  0xf3   :  { %v213_v40 = vpop.xlane.xlu1 %212 }
  0xf4   :  { %v217_v42 = vadd.f32 %v215_v41, %v213_v40 }
 0x1bc   :  { %v265_v36 = vpop.f32.mrb[0].mxu0 }
 0x1bd   :  { %v178_v37 = vadd.f32 %v265_v36, %v93_v33  ;;  %v168_v38 = vpop.f32.mrb[1].mxu0 }
 0x1be   :  { %v177_v39 = vadd.f32 %v168_v38, %v92_v35 }
 0x1bf   :  { %181 = vst.msk [vmem:[#allocation2 + $0x8] sm:$0xff] %vm68_vm1, %v178_v37 }
 0x1c0   :  { %180 = vst.msk [vmem:[#allocation2] sm:$0xff] %vm68_vm1, %v177_v39 }
 0x1c6   :  { %v219_v44 = vld [vmem:[#allocation2 + $0x8] sm:$0xff] }
 0x1c7   :  { %v218_v45 = vld [vmem:[#allocation2] sm:$0xff]  ;;  %v221_v46 = vadd.f32 %v219_v44, %v217_v42 }
 0x1c8   :  { %v220_v47 = vadd.f32 %v218_v45, %v216_v43 }
 0x1c9   :  { %223 = vst.msk [vmem:[%s501_s6 + $0x8] sm:$0xff] %vm68_vm1, %v221_v46  ;;  %v225_v48 = vsub.f32 %v221_v46, %v221_v46 }
 0x1ca   :  { %222 = vst.msk [vmem:[%s501_s6] sm:$0xff] %vm68_vm1, %v220_v47  ;;  %v224_v49 = vsub.f32 %v220_v47, %v220_v47 }
 0x1cb   :  { %v228_v50 = vmul.f32 1.442695, %v225_v48 }
 0x1cc   :  { %v226_v51 = vmul.f32 1.442695, %v224_v49 }
 0x1cd   :  { %292 = vpow2.f32 %v228_v50 }
 0x1ce   :  { %294 = vpow2.f32 %v226_v51 }
 0x1d7   :  { %v293_v52 = vpop.eup %292 }
 0x1d8   :  { %v295_v53 = vpop.eup %294  ;;  %296 = vrcp.f32 %v293_v52 }
 0x1d9   :  { %298 = vrcp.f32 %v295_v53 }
 0x1e2   :  { %v297_v54 = vpop.eup %296 }
 0x1e3   :  { %v299_v55 = vpop.eup %298  ;;  %v235_v56 = vmul.f32 %v297_v54, %v293_v52 }
 0x1e4   :  { %v234_v57 = vmul.f32 %v299_v55, %v295_v53 }
 0x1e5   :  { %237 = vst.msk [vmem:[%s500_s5 + $0x8] sm:$0xff] %vm68_vm1, %v235_v56 }
 0x1e6   :  { %236 = vst.msk [vmem:[%s500_s5] sm:$0xff] %vm68_vm1, %v234_v57 }
 0x1e7   :  { %246 = vsyncpa [#allocation5], 1 }
 0x1e8   :  { %247 = vsyncpa [#allocation7], 1 }

</bundles_post_ra>
